<compile_context>
chip_gen: v6e
topology: v6e:2x2x1
jax: 0.10.0
libtpu: 0.0.40
codegen_flags: <defaults>
</compile_context>

<pallas_src>
import jax
import jax.numpy as jnp
from jax.experimental import pallas as pl
from jax.experimental.pallas import tpu as pltpu

IN_FEATURES = 2
OUT_FEATURES = 1  # domain_hidden_state
SUBLANE = 8
MAX_TILE_B = 4096


def _round_up(n, m):
    return -(-n // m) * m


def _domain_encoder_kernel(x_ref, wb_ref, o_ref):
    # x_ref: (tile_b, 2) VMEM, wb_ref: (3,) SMEM [w0, w1, bias], o_ref: (tile_b, 1).
    x = x_ref[...]
    w0 = wb_ref[0]
    w1 = wb_ref[1]
    bias = wb_ref[2]
    y = x[:, 0:1] * w0 + x[:, 1:2] * w1 + bias      # pure VPU, no MXU
    o_ref[...] = y.astype(o_ref.dtype)


def domain_encoder_forward(x, params):
    """x: (B, 2) f32. params: {"w": (2, 1) f32, "b": (1, 1) f32}."""
    w, b = params["w"], params["b"]
    B, k = x.shape
    assert k == IN_FEATURES, x.shape
    out_dim = w.shape[1]
    assert out_dim == OUT_FEATURES, "kernel specialized for domain_hidden_state=1"

    if B == 0:
        return jnp.zeros((0, out_dim), x.dtype)

    # Batch tile: multiple of 8 sublanes, capped at MAX_TILE_B; for large B this
    # yields >=2 blocks so v7x's two TensorCores both get work.
    tile_b = min(MAX_TILE_B, _round_up(pl.cdiv(B, 2), SUBLANE))
    tile_b = max(tile_b, SUBLANE)
    b_pad = _round_up(B, tile_b)

    x_p = x if b_pad == B else jnp.pad(x, ((0, b_pad - B), (0, 0)))

    # Tiny scalar table for SMEM: [w0, w1, bias].
    wb = jnp.concatenate(
        [w.reshape(-1).astype(jnp.float32), b.reshape(-1).astype(jnp.float32)]
    )

    grid = (b_pad // tile_b,)

    out_p = pl.pallas_call(
        _domain_encoder_kernel,
        out_shape=jax.ShapeDtypeStruct((b_pad, out_dim), jnp.float32),
        grid=grid,
        in_specs=[
            # x streamed per batch tile; last dim (2) equals the full extent.
            pl.BlockSpec((tile_b, IN_FEATURES), lambda i: (i, 0)),
            # weights + bias live whole in SMEM, same for every grid step.
            pl.BlockSpec(memory_space=pltpu.MemorySpace.SMEM),
        ],
        out_specs=pl.BlockSpec((tile_b, out_dim), lambda i: (i, 0)),
        compiler_params=pltpu.CompilerParams(
            dimension_semantics=("parallel",),  # batch axis -> both TCs on v7x
        ),
        cost_estimate=pl.CostEstimate(
            flops=2 * B * IN_FEATURES * out_dim,
            transcendentals=0,
            bytes_accessed=(B * IN_FEATURES + B * out_dim + 3) * 4,
        ),
    )(x_p, wb)

    return out_p[:B, :]


def init_params(key, domain_hidden_state=1):
    """Matches DomainEncoder's init_weights: xavier_normal_ weight, zero bias.
    Weight stored transposed as (in_features, out_features)."""
    std = (2.0 / (IN_FEATURES + domain_hidden_state)) ** 0.5
    w = std * jax.random.normal(key, (IN_FEATURES, domain_hidden_state), jnp.float32)
    b = jnp.zeros((1, domain_hidden_state), jnp.float32)
    return {"w": w, "b": b}


def _reference(x, p):
    return x @ p["w"] + p["b"]


if __name__ == "__main__":
    key = jax.random.PRNGKey(0)
    kx, kw = jax.random.split(key)
    params = init_params(kw, domain_hidden_state=1)

    B = 8  # small batch; feature dim 2 fixed by the module
    x = jax.random.normal(kx, (B, IN_FEATURES), jnp.float32)

    out = domain_encoder_forward(x, params)
    out = jax.block_until_ready(out)

    ref = _reference(x, params)
    assert out.shape == (B, OUT_FEATURES), out.shape
    assert jnp.allclose(out, ref, atol=1e-5, rtol=1e-5), float(
        jnp.max(jnp.abs(out - ref))
    )
    print("KERNEL_OK")
</pallas_src>

<mosaic_0001>
module attributes {stable_mosaic.version = 11 : i64} {
  func.func @_domain_encoder_kernel(%arg0: i32, %arg1: memref<8x2xf32, #tpu.memory_space<vmem>>, %arg2: memref<3xf32, #tpu.memory_space<smem>>, %arg3: memref<8x1xf32, #tpu.memory_space<vmem>>) attributes {dimension_semantics = [#tpu.dimension_semantics<parallel>], iteration_bounds = array<i64: 1>, scalar_prefetch = 0 : i64, scratch_operands = 0 : i64, tpu.core_type = #tpu.core_type<tc>, window_params = [{transform_indices = @transform_0, window_bounds = array<i64: 8, 2>}, {transform_indices = @transform_1, window_bounds = array<i64: 3>}, {transform_indices = @transform_2, window_bounds = array<i64: 8, 1>}]} {
    %c0 = arith.constant 0 : index
    %c0_0 = arith.constant 0 : index
    %0 = vector.load %arg1[%c0, %c0_0] : memref<8x2xf32, #tpu.memory_space<vmem>>, vector<8x2xf32>
    %c0_1 = arith.constant 0 : index
    %1 = memref.load %arg2[%c0_1] : memref<3xf32, #tpu.memory_space<smem>>
    %c1 = arith.constant 1 : index
    %2 = memref.load %arg2[%c1] : memref<3xf32, #tpu.memory_space<smem>>
    %c2 = arith.constant 2 : index
    %3 = memref.load %arg2[%c2] : memref<3xf32, #tpu.memory_space<smem>>
    %4 = vector.extract_strided_slice %0 {offsets = [0, 0], sizes = [8, 1], strides = [1, 1]} : vector<8x2xf32> to vector<8x1xf32>
    %5 = vector.broadcast %1 : f32 to vector<8x1xf32>
    %6 = arith.mulf %4, %5 : vector<8x1xf32>
    %7 = vector.extract_strided_slice %0 {offsets = [0, 1], sizes = [8, 1], strides = [1, 1]} : vector<8x2xf32> to vector<8x1xf32>
    %8 = vector.broadcast %2 : f32 to vector<8x1xf32>
    %9 = arith.mulf %7, %8 : vector<8x1xf32>
    %10 = arith.addf %6, %9 : vector<8x1xf32>
    %11 = vector.broadcast %3 : f32 to vector<8x1xf32>
    %12 = arith.addf %10, %11 : vector<8x1xf32>
    %c0_2 = arith.constant 0 : index
    %c0_3 = arith.constant 0 : index
    %13 = vector.load %arg3[%c0_2, %c0_3] : memref<8x1xf32, #tpu.memory_space<vmem>>, vector<8x1xf32>
    tpu.vector_store %arg3[%c0_2, %c0_3], %12 {strides = array<i32>} : memref<8x1xf32, #tpu.memory_space<vmem>>, vector<8x1xf32>,
    return
  }
  func.func @transform_0(%arg0: i32) -> (i32, i32) {
    %c0_i32 = arith.constant 0 : i32
    %c0_i32_0 = arith.constant 0 : i32
    return %arg0, %c0_i32 : i32, i32
  }
  func.func @transform_1(%arg0: i32) -> i32 {
    %c0_i32 = arith.constant 0 : i32
    %c0_i32_0 = arith.constant 0 : i32
    return %c0_i32 : i32
  }
  func.func @transform_2(%arg0: i32) -> (i32, i32) {
    %c0_i32 = arith.constant 0 : i32
    %c0_i32_0 = arith.constant 0 : i32
    return %arg0, %c0_i32 : i32, i32
  }
}

</mosaic_0001>

<bundles_post_ra>
// kernel: tpu_custom_call.1
= control target key start
LH: loop header
LB: loop body
LE: loop exit
PB: predicated region body
PF: predicated region fallthrough
CT: control target
= control target key end

     0   :  { %7 = vsyncpa [#allocation3], 0  ;;  %s90_s0 = inlined_call_operand.vmem [shape: f32[8,2], index: 0, kind: input, shape index: {}]   ;;  %s91_s1 = inlined_call_operand.vmem [shape: f32[3], index: 1, kind: input, shape index: {}]   ;;  %s92_s2 = inlined_call_operand.vmem [shape: f32[8,1], index: 2, kind: output, shape index: {}]  }
   0x1   :  { %s16_s11 = sshll.u32 %s91_s1, 4  ;;  %s17_s11 = int_to_ptr.vmem [resolvable:$true] %s16_s11 }
   0x2   :  { %s50_s12 = scalar_lea.vmem %s17_s11, 16  ;;  %p55_p1 = scmp.lt.s32.totalorder %s17_s11, %s17_s11 }
   0x3   :  { %p51_p0 = scmp.ne.s32.totalorder %s17_s11, %s50_s12  ;;  %p56_p2 = scmp.lt.s32.totalorder %s50_s12, %s50_s12 }
   0x5   :  { %p57_p3 = por %p56_p2, %p55_p1 }
   0x7   :  { %p58_p4 = pnand %p57_p3, %p51_p0 }
   0x9   :  { %61 = shalt.err (!%p58_p4)
}
   0xa   :  { %s64_s13 = smov [#allocation2]  }
   0xb   :  { %19 = dma.vmem_to_smem %s17_s11, 16, %s64_s13, [#allocation3]  }
   0xc   :  { %62 = dma.done.wait [#allocation3], 16  }
   0xd   :  { %63 = vsyncadd [#allocation3], 4294967280 }
   0xe   :  { %23 = sfence }
   0xf   :  { %s46_s14 = sld [smem:[#allocation2 + $0x1]]  ;;  %v24_v0 = vld [vmem:[%s90_s0] sm:$0xff]  ;;  %s65_s1 = smov 127   ;;  %vm39_vm0 = vcmask 7168  }
  0x10   :  { %s25_s17 = sld [smem:[#allocation2]] }
  0x11   :  { %s47_s18 = sld [smem:[#allocation2 + $0x2]] }
  0x15   :  { %v30_v1 = vstv %s46_s14 }
  0x16   :  { %v31_v2 = vmul.f32 %v30_v1, %v24_v0  ;;  %v28_v3 = vstv %s25_s17 }
  0x17   :  { %v29_v4 = vmul.f32 %v28_v3, %v24_v0  ;;  %v37_v6 = vstv %s47_s18 }
  0x18   :  { %33 = vrot.lane.b32.xlu0 %v31_v2, %s65_s1 }
  0x8a   :  { %v34_v5 = vpop.permute.xlu0 %33 }
  0x8b   :  { %v36_v7 = vadd.f32 %v34_v5, %v29_v4 }
  0x8d   :  { %v38_v8 = vadd.f32 %v37_v6, %v36_v7 }
  0x8f   :  { %40 = vst.msk [vmem:[%s92_s2] sm:$0xff] %vm39_vm0, %v38_v8 }
  0x90   :  { %45 = vsyncpa [#allocation3], 1 }

</bundles_post_ra>
